<compile_context>
chip_gen: v7x
topology: tpu7x:2x2x1
jax: 0.10.0
libtpu: 0.0.40
codegen_flags: <defaults>
</compile_context>

<pallas_src>
import functools

import jax
import jax.numpy as jnp
from jax.experimental import pallas as pl
from jax.experimental.pallas import tpu as pltpu

T_DEFAULT = 4.0


def _distill_kl_kernel(ys_ref, yt_ref, out_ref, *, inv_temp, batch, tile_b):
    i = pl.program_id(0)

    # Temperature scaling as a VPU multiply (inv_temp precomputed in Python).
    # Inputs may be bf16 in HBM; compute is f32 inside the kernel.
    ys = ys_ref[...].astype(jnp.float32) * inv_temp
    yt = yt_ref[...].astype(jnp.float32) * inv_temp

    # Numerically-stable log-softmax pieces for the student (classes = lanes).
    ys_max = jnp.max(ys, axis=-1, keepdims=True)
    ys_sh = ys - ys_max
    log_z_s = jnp.log(jnp.sum(jnp.exp(ys_sh), axis=-1, keepdims=True))

    # Numerically-stable softmax pieces for the teacher.
    yt_max = jnp.max(yt, axis=-1, keepdims=True)
    yt_sh = yt - yt_max
    exp_t = jnp.exp(yt_sh)
    z_t = jnp.sum(exp_t, axis=-1, keepdims=True)
    log_z_t = jnp.log(z_t)

    # Per-element: p_t * (log p_t - log p_s)
    #   = (exp_t / z_t) * ((yt_sh - log z_t) - (ys_sh - log z_s))
    # 1/z_t comes from the EUP (approx) and is broadcast per row.
    inner = yt_sh - ys_sh + (log_z_s - log_z_t)              # [TB, C]
    recip_z_t = pl.reciprocal(z_t, approx=True)              # [TB, 1], EUP slot
    contrib = (exp_t * inner) * recip_z_t                    # [TB, C]

    # Mask rows past the true batch (last ragged tile reads garbage past the
    # array edge). A true select: NaN/Inf in padded rows cannot propagate.
    row_ids = i * tile_b + jax.lax.broadcasted_iota(jnp.int32, contrib.shape, 0)
    contrib = jnp.where(row_ids < batch, contrib, 0.0)

    # Batch (sublane) reduction -> lane-dense per-class partial for this tile.
    partial = jnp.sum(contrib, axis=0, keepdims=True)        # [1, C]
    out_ref[...] = partial.reshape(out_ref.shape)            # (1, 1, C)


def _vmem_limit_bytes():
    """Explicit scoped-VMEM limit sized from the chip's physical VMEM."""
    try:
        cap = int(pltpu.get_tpu_info().vmem_capacity_bytes)
    except Exception:  # unknown backend / interpret mode
        cap = 64 * 1024 * 1024
    if cap >= 128 * 1024 * 1024:          # v5e / v6e: 128 MiB physical
        return 64 * 1024 * 1024
    return min(48 * 1024 * 1024, (cap * 3) // 4)   # v7x: 64 MiB physical


def _sublane_align(itemsize):
    # Sub-32-bit dtypes pack rows along sublanes: 8 for f32, 16 bf16, 32 int8.
    return max(8, 32 // max(itemsize, 1))


def _pick_tile_b(batch, num_classes, in_itemsize, sublane, vmem_limit):
    # VMEM accounting per batch row:
    #   inputs     : 2 arrays x 2 pipeline buffers x C x input itemsize
    #   temporaries: ~6 live f32 [TB, C] intermediates inside the kernel
    bytes_per_row = num_classes * (4 * in_itemsize + 6 * 4)
    budget = max(vmem_limit - (4 << 20), 1 << 20)  # headroom for outputs/scratch
    tb = budget // max(bytes_per_row, 1)
    tb = int(min(tb, 8192))                        # bound per-step vreg pressure

    # Ensure >= 2 grid steps whenever the batch can be split with alignment,
    # so v7x's two TensorCores both get work (neutral on v5e/v6e).
    half_rows = (batch + 1) // 2
    half = sublane * ((half_rows + sublane - 1) // sublane)
    if half < batch:
        tb = min(tb, half)

    tb -= tb % sublane
    tb = max(tb, sublane)
    if tb >= batch:
        return batch  # single full-batch tile; full-dim block is layout-legal
    return tb


def distill_kl(y_s, y_t, temperature=T_DEFAULT, tile_b=None):
    assert y_s.shape == y_t.shape and y_s.ndim == 2
    batch, num_classes = y_s.shape
    in_itemsize = jnp.dtype(y_s.dtype).itemsize
    sublane = _sublane_align(in_itemsize)
    vmem_limit = _vmem_limit_bytes()

    if tile_b is None:
        tile_b = _pick_tile_b(batch, num_classes, in_itemsize, sublane, vmem_limit)
    assert tile_b == batch or tile_b % sublane == 0, (
        "tile_b must be sublane-aligned for the input dtype or == batch")

    num_tiles = -(-batch // tile_b)

    kernel = functools.partial(
        _distill_kl_kernel,
        inv_temp=1.0 / float(temperature),
        batch=batch,
        tile_b=tile_b,
    )

    # Per-tile, per-class KL partials (lane-dense (1, 1, C) blocks).
    partials = pl.pallas_call(
        kernel,
        out_shape=jax.ShapeDtypeStruct((num_tiles, 1, num_classes), jnp.float32),
        grid=(num_tiles,),
        in_specs=[
            pl.BlockSpec((tile_b, num_classes), lambda i: (i, 0)),
            pl.BlockSpec((tile_b, num_classes), lambda i: (i, 0)),
        ],
        out_specs=pl.BlockSpec((1, 1, num_classes), lambda i: (i, 0, 0)),
        compiler_params=pltpu.CompilerParams(
            dimension_semantics=("parallel",),
            vmem_limit_bytes=vmem_limit,
        ),
    )(y_s, y_t)

    # Tiny final reduction + T^2/B scaling in the wrapper (keeps the grid axis
    # parallel / megacore-shardable instead of a serialized accumulator).
    scale = (float(temperature) ** 2) / batch
    return jnp.sum(partials) * scale


def _reference(y_s, y_t, temperature=T_DEFAULT):
    # Pure-JAX reference mirroring the PyTorch module.
    log_p_s = jax.nn.log_softmax(y_s.astype(jnp.float32) / temperature, axis=1)
    p_t = jax.nn.softmax(y_t.astype(jnp.float32) / temperature, axis=1)
    log_p_t = jax.nn.log_softmax(y_t.astype(jnp.float32) / temperature, axis=1)
    kl = jnp.sum(p_t * (log_p_t - log_p_s))
    return kl * temperature**2 / y_s.shape[0]


if __name__ == "__main__":
    key = jax.random.PRNGKey(0)
    ks = jax.random.split(key, 6)

    # Tolerance note: approx=True reciprocal (EUP) introduces a small relative
    # error in the per-row teacher normalization; 2e-3 rtol is a wide margin.
    RTOL, ATOL = 2e-3, 1e-6

    # Case 1: small aligned logits (batch=8, classes=128); batch too small to
    # split with alignment, so a single full-batch tile.
    B, C = 8, 128
    y_s = jax.random.normal(ks[0], (B, C), dtype=jnp.float32)
    y_t = jax.random.normal(ks[1], (B, C), dtype=jnp.float32)
    loss = jax.block_until_ready(distill_kl(y_s, y_t))
    ref = _reference(y_s, y_t)
    assert jnp.allclose(loss, ref, rtol=RTOL, atol=ATOL), (loss, ref)

    # Case 2: ragged batch (20 rows, tile_b=8) exercises the multi-tile grid
    # and the padded-row masking path on the last tile.
    B2, C2 = 20, 128
    y_s2 = jax.random.normal(ks[2], (B2, C2), dtype=jnp.float32)
    y_t2 = jax.random.normal(ks[3], (B2, C2), dtype=jnp.float32)
    loss2 = jax.block_until_ready(distill_kl(y_s2, y_t2, tile_b=8))
    ref2 = _reference(y_s2, y_t2)
    assert jnp.allclose(loss2, ref2, rtol=RTOL, atol=ATOL), (loss2, ref2)

    # Case 3: bf16 logits (bandwidth-saving caller contract); auto tiling
    # splits the batch into 2 grid steps (16-row bf16-aligned tiles).
    B3, C3 = 32, 256
    y_s3 = jax.random.normal(ks[4], (B3, C3), dtype=jnp.float32).astype(jnp.bfloat16)
    y_t3 = jax.random.normal(ks[5], (B3, C3), dtype=jnp.float32).astype(jnp.bfloat16)
    loss3 = jax.block_until_ready(distill_kl(y_s3, y_t3))
    ref3 = _reference(y_s3, y_t3)
    assert jnp.allclose(loss3, ref3, rtol=RTOL, atol=ATOL), (loss3, ref3)

    print("KERNEL_OK")
</pallas_src>

<mosaic_0001>
module attributes {stable_mosaic.version = 11 : i64} {
  func.func @_distill_kl_kernel(%arg0: i32, %arg1: memref<8x128xf32, #tpu.memory_space<vmem>>, %arg2: memref<8x128xf32, #tpu.memory_space<vmem>>, %arg3: memref<1x1x128xf32, #tpu.memory_space<vmem>>) attributes {dimension_semantics = [#tpu.dimension_semantics<parallel>], iteration_bounds = array<i64: 1>, scalar_prefetch = 0 : i64, scratch_operands = 0 : i64, tpu.core_type = #tpu.core_type<tc>, window_params = [{transform_indices = @transform_0, window_bounds = array<i64: 8, 128>}, {transform_indices = @transform_1, window_bounds = array<i64: 8, 128>}, {transform_indices = @transform_2, window_bounds = array<i64: 1, 1, 128>}]} {
    %c0 = arith.constant 0 : index
    %c0_0 = arith.constant 0 : index
    %0 = vector.load %arg1[%c0, %c0_0] : memref<8x128xf32, #tpu.memory_space<vmem>>, vector<8x128xf32>
    %cst = arith.constant 2.500000e-01 : f32
    %1 = vector.broadcast %cst : f32 to vector<8x128xf32>
    %2 = arith.mulf %0, %1 : vector<8x128xf32>
    %c0_1 = arith.constant 0 : index
    %c0_2 = arith.constant 0 : index
    %3 = vector.load %arg2[%c0_1, %c0_2] : memref<8x128xf32, #tpu.memory_space<vmem>>, vector<8x128xf32>
    %cst_3 = arith.constant 2.500000e-01 : f32
    %4 = vector.broadcast %cst_3 : f32 to vector<8x128xf32>
    %5 = arith.mulf %3, %4 : vector<8x128xf32>
    %cst_4 = arith.constant dense<0xFF800000> : vector<8xf32>
    %6 = vector.multi_reduction <maximumf>, %2, %cst_4 [1] : vector<8x128xf32> to vector<8xf32>
    %7 = vector.shape_cast %6 : vector<8xf32> to vector<8x1xf32>
    %8 = vector.broadcast %7 : vector<8x1xf32> to vector<8x128xf32>
    %9 = arith.subf %2, %8 : vector<8x128xf32>
    %10 = math.exp %9 : vector<8x128xf32>
    %cst_5 = arith.constant dense<0.000000e+00> : vector<8xf32>
    %11 = vector.multi_reduction <add>, %10, %cst_5 [1] : vector<8x128xf32> to vector<8xf32>
    %12 = vector.shape_cast %11 : vector<8xf32> to vector<8x1xf32>
    %13 = math.log %12 : vector<8x1xf32>
    %cst_6 = arith.constant dense<0xFF800000> : vector<8xf32>
    %14 = vector.multi_reduction <maximumf>, %5, %cst_6 [1] : vector<8x128xf32> to vector<8xf32>
    %15 = vector.shape_cast %14 : vector<8xf32> to vector<8x1xf32>
    %16 = vector.broadcast %15 : vector<8x1xf32> to vector<8x128xf32>
    %17 = arith.subf %5, %16 : vector<8x128xf32>
    %18 = math.exp %17 : vector<8x128xf32>
    %cst_7 = arith.constant dense<0.000000e+00> : vector<8xf32>
    %19 = vector.multi_reduction <add>, %18, %cst_7 [1] : vector<8x128xf32> to vector<8xf32>
    %20 = vector.shape_cast %19 : vector<8xf32> to vector<8x1xf32>
    %21 = math.log %20 : vector<8x1xf32>
    %22 = arith.subf %17, %9 : vector<8x128xf32>
    %23 = arith.subf %13, %21 : vector<8x1xf32>
    %24 = vector.broadcast %23 : vector<8x1xf32> to vector<8x128xf32>
    %25 = arith.addf %22, %24 : vector<8x128xf32>
    %26 = tpu.reciprocal %20 {approx = true} : vector<8x1xf32> -> vector<8x1xf32>
    %27 = arith.mulf %18, %25 : vector<8x128xf32>
    %28 = vector.broadcast %26 : vector<8x1xf32> to vector<8x128xf32>
    %29 = arith.mulf %27, %28 : vector<8x128xf32>
    %c8_i32 = arith.constant 8 : i32
    %30 = arith.muli %arg0, %c8_i32 : i32
    %31 = tpu.iota {dimensions = array<i32: 0>} : vector<8x128xi32>
    %32 = vector.broadcast %30 : i32 to vector<8x128xi32>
    %33 = arith.addi %32, %31 : vector<8x128xi32>
    %c8_i32_8 = arith.constant 8 : i32
    %34 = vector.broadcast %c8_i32_8 : i32 to vector<8x128xi32>
    %35 = arith.cmpi slt, %33, %34 : vector<8x128xi32>
    %cst_9 = arith.constant 0.000000e+00 : f32
    %36 = vector.broadcast %cst_9 : f32 to vector<8x128xf32>
    %37 = arith.select %35, %29, %36 : vector<8x128xi1>, vector<8x128xf32>
    %cst_10 = arith.constant dense<0.000000e+00> : vector<128xf32>
    %38 = vector.multi_reduction <add>, %37, %cst_10 [0] : vector<8x128xf32> to vector<128xf32>
    %39 = vector.shape_cast %38 : vector<128xf32> to vector<1x128xf32>
    %40 = vector.shape_cast %39 : vector<1x128xf32> to vector<1x1x128xf32>
    %c0_11 = arith.constant 0 : index
    %c0_12 = arith.constant 0 : index
    %c0_13 = arith.constant 0 : index
    %41 = vector.load %arg3[%c0_11, %c0_12, %c0_13] : memref<1x1x128xf32, #tpu.memory_space<vmem>>, vector<1x1x128xf32>
    tpu.vector_store %arg3[%c0_11, %c0_12, %c0_13], %40 {strides = array<i32>} : memref<1x1x128xf32, #tpu.memory_space<vmem>>, vector<1x1x128xf32>,
    return
  }
  func.func @transform_0(%arg0: i32) -> (i32, i32) {
    %c0_i32 = arith.constant 0 : i32
    %c0_i32_0 = arith.constant 0 : i32
    return %arg0, %c0_i32 : i32, i32
  }
  func.func @transform_1(%arg0: i32) -> (i32, i32) {
    %c0_i32 = arith.constant 0 : i32
    %c0_i32_0 = arith.constant 0 : i32
    return %arg0, %c0_i32 : i32, i32
  }
  func.func @transform_2(%arg0: i32) -> (i32, i32, i32) {
    %c0_i32 = arith.constant 0 : i32
    %c0_i32_0 = arith.constant 0 : i32
    %c0_i32_1 = arith.constant 0 : i32
    return %arg0, %c0_i32, %c0_i32_0 : i32, i32, i32
  }
}

</mosaic_0001>

<bundles_post_ra>
// kernel: tpu_custom_call.1
= control target key start
LH: loop header
LB: loop body
LE: loop exit
PB: predicated region body
PF: predicated region fallthrough
CT: control target
= control target key end

     0   :  { %7 = vsyncpa [#allocation3], 0  ;;  %s233_s0 = inlined_call_operand.hbm [shape: f32[8,128], index: 0, kind: input, shape index: {}]   ;;  %s234_s1 = inlined_call_operand.hbm [shape: f32[8,128], index: 1, kind: input, shape index: {}]   ;;  %s235_s2 = inlined_call_operand.hbm [shape: f32[1,1,128], index: 2, kind: output, shape index: {}]  }
   0x1   :  { %8 = vsyncpa [#allocation6], 0 }
   0x2   :  { %9 = vsyncpa [#allocation4], 0  ;;  %s179_s9 = smov [#allocation2]   ;;  %s180_s11 = smov [#allocation5]  }
   0x3   :  { %s16_s10 = sshll.u32 %s179_s9, 4  ;;  %s26_s12 = sshll.u32 %s180_s11, 4  ;;  %s17_s10 = int_to_ptr.vmem [resolvable:$true] %s16_s10  ;;  %s27_s12 = int_to_ptr.vmem [resolvable:$true] %s26_s12 }
   0x4   :  { %s107_s15 = scalar_lea.hbm %s233_s0, 128 }
   0x5   :  { %p108_p0 = scmp.ne.s32.totalorder %s233_s0, %s107_s15  ;;  %p111_p1 = scmp.lt.u32.totalorder %s107_s15, %s233_s0 }
   0x7   :  { %p113_p2 = pnand %p111_p1, %p108_p0 }
   0x9   :  { %116 = shalt.err (!%p113_p2)
}
   0xa   :  { %s117_s20 = scalar_lea.vmem %s17_s10, 128  ;;  %p122_p4 = scmp.lt.s32.totalorder %s17_s10, %s17_s10 }
   0xb   :  { %p118_p3 = scmp.ne.s32.totalorder %s17_s10, %s117_s20  ;;  %p123_p5 = scmp.lt.s32.totalorder %s117_s20, %s117_s20 }
   0xd   :  { %p124_p6 = por %p123_p5, %p122_p4 }
   0xf   :  { %p125_p7 = pnand %p124_p6, %p118_p3 }
  0x11   :  { %128 = shalt.err (!%p125_p7)
}
  0x12   :  { %19 = dma.hbm_to_vmem [thread:$0]  %s233_s0, 128, %s17_s10, [#allocation3]  }
  0x13   :  { %s129_s25 = scalar_lea.hbm %s234_s1, 128 }
  0x14   :  { %p130_p8 = scmp.ne.s32.totalorder %s234_s1, %s129_s25  ;;  %p133_p9 = scmp.lt.u32.totalorder %s129_s25, %s234_s1 }
  0x16   :  { %p135_p10 = pnand %p133_p9, %p130_p8 }
  0x18   :  { %138 = shalt.err (!%p135_p10)
}
  0x19   :  { %s139_s30 = scalar_lea.vmem %s27_s12, 128  ;;  %p144_p12 = scmp.lt.s32.totalorder %s27_s12, %s27_s12 }
  0x1a   :  { %p140_p11 = scmp.ne.s32.totalorder %s27_s12, %s139_s30  ;;  %p145_p13 = scmp.lt.s32.totalorder %s139_s30, %s139_s30 }
  0x1c   :  { %p146_p0 = por %p145_p13, %p144_p12 }
  0x1e   :  { %p147_p1 = pnand %p146_p0, %p140_p11 }
  0x20   :  { %150 = shalt.err (!%p147_p1)
}
  0x21   :  { %29 = dma.hbm_to_vmem [thread:$0]  %s234_s1, 128, %s27_s12, [#allocation6]  }
  0x22   :  { %173 = dma.done.wait [#allocation3], 128  }
  0x23   :  { %174 = vsyncadd [#allocation3], 4294967168 }
  0x24   :  { %175 = dma.done.wait [#allocation6], 128  }
  0x25   :  { %176 = vsyncadd [#allocation6], 4294967168  ;;  %v36_v0 = vld [vmem:[#allocation2] sm:$0xff]  ;;  %v38_v1 = vld [vmem:[#allocation5] sm:$0xff]  ;;  %s181_s1 = smov [#allocation7]  }
  0x26   :  { %v37_v2 = vmul.f32 0.25, %v36_v0  ;;  %v39_v3 = vmul.f32 0.25, %v38_v1  ;;  %s84_s4 = sshll.u32 %s181_s1, 4  ;;  %s85_s4 = int_to_ptr.vmem [resolvable:$true] %s84_s4 }
  0x27   :  { %s151_s5 = scalar_lea.vmem %s85_s4, 16  ;;  %s155_s6 = scalar_lea.vmem %s85_s4, 32 }
  0x28   :  { %40 = vmax.xlane.f32.xlu0 %v37_v2  ;;  %p152_p2 = scmp.ne.s32.totalorder %s85_s4, %s151_s5  ;;  %p156_p3 = scmp.lt.s32.totalorder %s85_s4, %s85_s4 }
  0x29   :  { %p157_p4 = scmp.lt.s32.totalorder %s155_s6, %s151_s5 }
  0x2b   :  { %p158_p5 = por %p157_p4, %p156_p3 }
  0x2c   :  { %49 = vmax.xlane.f32.xlu0 %v39_v3 }
  0x2d   :  { %p159_p6 = pnand %p158_p5, %p152_p2 }
  0xb5   :  { %v41_v4 = vpop.xlane.xlu0 %40 }
  0xb6   :  { %v42_v5 = vsub.f32 %v37_v2, %v41_v4 }
  0xb8   :  { %v43_v6 = vmul.f32 1.442695, %v42_v5 }
  0xb9   :  { %v50_v7 = vpop.xlane.xlu0 %49 }
  0xba   :  { %v51_v8 = vsub.f32 %v39_v3, %v50_v7  ;;  %97 = vpow2.f32 %v43_v6 }
  0xbc   :  { %v52_v9 = vmul.f32 1.442695, %v51_v8  ;;  %v58_v10 = vsub.f32 %v51_v8, %v42_v5 }
  0xbe   :  { %99 = vpow2.f32 %v52_v9 }
  0xc4   :  { %v98_v11 = vpop.eup %97 }
  0xc5   :  { %45 = vadd.xlane.f32.xlu1 %v98_v11 }
  0xc8   :  { %v100_v12 = vpop.eup %99 }
  0xc9   :  { %54 = vadd.xlane.f32.xlu1 %v100_v12 }
 0x152   :  { %v46_v13 = vpop.xlane.xlu1 %45 }
 0x153   :  { %101 = vlog2.f32 %v46_v13 }
 0x156   :  { %v55_v14 = vpop.xlane.xlu1 %54 }
 0x157   :  { %103 = vlog2.f32 %v55_v14 }
 0x158   :  { %105 = vrcp.f32 %v55_v14 }
 0x15d   :  { %v102_v15 = vpop.eup %101 }
 0x15e   :  { %v48_v17 = vmul.f32 0.6931472, %v102_v15 }
 0x161   :  { %v104_v16 = vpop.eup %103 }
 0x162   :  { %v57_v18 = vmul.f32 0.6931472, %v104_v16  ;;  %v106_v22 = vpop.eup %105 }
 0x164   :  { %v59_v19 = vsub.f32 %v48_v17, %v57_v18 }
 0x166   :  { %v60_v20 = vadd.f32 %v59_v19, %v58_v10 }
 0x168   :  { %v62_v21 = vmul.f32 %v100_v12, %v60_v20 }
 0x16a   :  { %v63_v23 = vmul.f32 %v106_v22, %v62_v21 }
 0x16c   :  { %v71_v24 = vrot.slane %v63_v23, 4 }
 0x16e   :  { %v72_v25 = vadd.f32 %v71_v24, %v63_v23 }
 0x170   :  { %v73_v26 = vrot.slane %v72_v25, 2 }
 0x172   :  { %v74_v27 = vadd.f32 %v73_v26, %v72_v25 }
 0x174   :  { %v75_v28 = vrot.slane %v74_v27, 1 }
 0x176   :  { %v76_v29 = vadd.f32 %v75_v28, %v74_v27 }
 0x178   :  { %77 = vst [vmem:[#allocation7] sm:$0x1] %v76_v29 }
 0x179   :  { %162 = shalt.err (!%p159_p6)
}
 0x17a   :  { %s163_s9 = scalar_lea.hbm %s235_s2, 16 }
 0x17b   :  { %p164_p7 = scmp.ne.s32.totalorder %s235_s2, %s163_s9  ;;  %p167_p8 = scmp.lt.u32.totalorder %s163_s9, %s235_s2 }
 0x17d   :  { %p169_p9 = pnand %p167_p8, %p164_p7 }
 0x17f   :  { %172 = shalt.err (!%p169_p9)
}
 0x180   :  { %87 = dma.vmem_to_hbm [thread:$0]  %s85_s4, 16, %s235_s2, [#allocation4]  }
 0x181   :  { %177 = dma.done.wait [#allocation4], 16  }
 0x182   :  { %178 = vsyncadd [#allocation4], 4294967280 }
 0x183   :  { %91 = vsyncpa [#allocation3], 1 }
 0x184   :  { %92 = vsyncpa [#allocation6], 1 }
 0x185   :  { %93 = vsyncpa [#allocation4], 1 }

</bundles_post_ra>
